<compile_context>
chip_gen: v7x
topology: tpu7x:2x2x1
jax: 0.10.0
libtpu: 0.0.40
codegen_flags: <defaults>
</compile_context>

<pallas_src>
import math
from functools import partial

import jax
import jax.numpy as jnp
from jax.experimental import pallas as pl
from jax.experimental.pallas import tpu as pltpu

# Pin matmul precision so the in-kernel MXU dots and the pure-JAX reference use the
# same (true-f32) precision; lets the correctness check run at ~1e-5 tolerance.
jax.config.update("jax_default_matmul_precision", "highest")


def make_cnn_kernel(B_blk, L, K):
    """Kernel for one batch block laid out as x: (C_pad, B_blk*L) (batch on lanes)."""
    Lf = B_blk * L             # flattened (batch-major) lane width, constant throughout
    L2 = L - 2 * (K - 1)       # per-sample conv2 output length (valid columns per sample)

    def kernel(x_ref, w1_ref, b1_ref, w2_ref, b2_ref, wf_ref, bf_ref, o_ref):
        # x_ref : (C_pad, Lf)    channels zero-padded to 8 sublanes, batch folded on lanes
        # w1_ref: (NF, K*C_pad)  im2col-packed conv1 weight, b1_ref: (NF, 1)
        # w2_ref: (NF, K*NF)     im2col-packed conv2 weight, b2_ref: (NF, 1)
        # wf_ref: (OUT, NF)      fc1 weight,                 bf_ref: (OUT, 1)
        # o_ref : (OUT, B_blk)   batch on lanes
        C_pad = x_ref.shape[0]
        NF = w1_ref.shape[0]
        x = x_ref[...]

        # conv1 (valid, stride 1) as ONE matmul: im2col on the contraction dim, but
        # every shifted tap copy is kept at the full lane width Lf (zero-extended tail).
        # Columns whose window straddles a batch boundary / the tail are garbage but are
        # never read by any valid conv2 window nor by the per-sample pooling below.
        xz = jnp.concatenate([x, jnp.zeros((C_pad, K - 1), jnp.float32)], axis=1)
        p1 = jnp.concatenate([xz[:, k:k + Lf] for k in range(K)], axis=0)       # (K*C_pad, Lf)
        h1 = jnp.maximum(
            jnp.dot(w1_ref[...], p1, preferred_element_type=jnp.float32)
            + b1_ref[...], 0.0)                                                 # (NF, Lf)

        # conv2 + ReLU, same single-matmul im2col structure, again full Lf width.
        h1z = jnp.concatenate([h1, jnp.zeros((NF, K - 1), jnp.float32)], axis=1)
        p2 = jnp.concatenate([h1z[:, k:k + Lf] for k in range(K)], axis=0)      # (K*NF, Lf)
        h2 = jnp.maximum(
            jnp.dot(w2_ref[...], p2, preferred_element_type=jnp.float32)
            + b2_ref[...], 0.0)                                                 # (NF, Lf)

        # adaptive_max_pool1d(., 1): per-sample max over that sample's L2 valid columns.
        # One concatenate of per-sample lane-reductions (no iota/where/broadcast chain).
        pooled = jnp.concatenate(
            [jnp.max(h2[:, b * L:b * L + L2], axis=1, keepdims=True)
             for b in range(B_blk)], axis=1)                                    # (NF, B_blk)

        # Dropout: inference mode => identity.
        # TODO(synk): training-mode dropout (stateful PRNG mask) not implemented.

        # fc1: a single (OUT, NF) @ (NF, B_blk) matmul, batch stays on lanes.
        o_ref[...] = (jnp.dot(wf_ref[...], pooled, preferred_element_type=jnp.float32)
                      + bf_ref[...])                                            # (OUT, B_blk)

    return kernel


@partial(jax.jit, static_argnames=("kernel_size", "batch_block"))
def custom_cnn_forward(x, packed_params, *, kernel_size, batch_block=None):
    """x: (B, C_in, L) float32 -> (B, OUT) float32.  Whole thing is one jit'd function
    so the x repack and the final transpose fuse with their neighbours."""
    w1p, b1, w2p, b2, wf, bf = packed_params
    B, C_in, L = x.shape
    K = kernel_size
    NF = w1p.shape[0]
    OUT = wf.shape[0]
    c_pad = w1p.shape[1] // K          # sublane-padded channel count (>= C_in, mult of 8)

    # The flattened-conv trick only skips batch-boundary columns if every sample has at
    # least one valid conv2 column.
    assert L >= 2 * K - 1, "flattened conv requires L >= 2*kernel_size - 1"

    bb = B if batch_block is None else batch_block
    assert B % bb == 0, "batch_block must divide the batch size"

    # Host-side layout plumbing (fused under jit): pad channels to 8 sublanes and fold
    # batch into the trailing (lane) axis.
    x_p = jnp.pad(x.astype(jnp.float32), ((0, 0), (0, c_pad - C_in), (0, 0)))
    x_flat = jnp.transpose(x_p, (1, 0, 2)).reshape(c_pad, B * L)

    # grid over batch blocks; weights use constant index_maps so they stay VMEM-resident
    # across steps.  At the toy test size batch_block == B -> grid=(1,): per-grid-step
    # overhead (~0.35us) would otherwise dominate.  At production sizes pick bb so that
    # bb*L is a multiple of 128 (lane-dense blocks, two v7x TensorCores both get work)
    # and raise vmem_limit_bytes if the per-block im2col buffers grow.
    out = pl.pallas_call(
        make_cnn_kernel(bb, L, K),
        out_shape=jax.ShapeDtypeStruct((OUT, B), jnp.float32),
        grid=(B // bb,),
        in_specs=[
            pl.BlockSpec((c_pad, bb * L), lambda i: (0, i)),
            pl.BlockSpec((NF, K * c_pad), lambda i: (0, 0)),
            pl.BlockSpec((NF, 1), lambda i: (0, 0)),
            pl.BlockSpec((NF, K * NF), lambda i: (0, 0)),
            pl.BlockSpec((NF, 1), lambda i: (0, 0)),
            pl.BlockSpec((OUT, NF), lambda i: (0, 0)),
            pl.BlockSpec((OUT, 1), lambda i: (0, 0)),
        ],
        out_specs=pl.BlockSpec((OUT, bb), lambda i: (0, i)),
        compiler_params=pltpu.CompilerParams(dimension_semantics=("parallel",)),
    )(x_flat, w1p, b1, w2p, b2, wf, bf)

    return out.T  # (B, OUT) -- transpose fuses under jit


def init_torch_params(key, input_size, output_size, num_filters, kernel_size):
    """Matches CustomCNN.initialize_weights: kaiming_uniform_(nonlinearity='relu') on
    every weight, zeros on every bias.  Weights kept in torch layouts."""
    def kaiming_uniform(k, shape, fan_in):
        bound = math.sqrt(2.0) * math.sqrt(3.0 / fan_in)
        return jax.random.uniform(k, shape, jnp.float32, -bound, bound)

    k1, k2, k3 = jax.random.split(key, 3)
    w1 = kaiming_uniform(k1, (num_filters, input_size, kernel_size),
                         input_size * kernel_size)                    # Conv1d: (out, in, K)
    b1 = jnp.zeros((num_filters,), jnp.float32)
    w2 = kaiming_uniform(k2, (num_filters, num_filters, kernel_size),
                         num_filters * kernel_size)
    b2 = jnp.zeros((num_filters,), jnp.float32)
    wf = kaiming_uniform(k3, (output_size, num_filters), num_filters)  # Linear: (out, in)
    bf = jnp.zeros((output_size,), jnp.float32)
    return (w1, b1, w2, b2, wf, bf)


def pack_params(torch_params):
    """Host-side repack into the kernel's im2col / lane-friendly layouts.
    conv1 channels are zero-padded to 8 so each im2col tap piece is sublane-aligned."""
    w1, b1, w2, b2, wf, bf = torch_params
    NF, C_in, K = w1.shape
    c_pad = max(8, ((C_in + 7) // 8) * 8)
    # (C_out, C_in, K) -> pad C_in -> (C_out, K, C_pad) -> (C_out, K*C_pad); col = k*C_pad + c
    w1p = jnp.pad(w1, ((0, 0), (0, c_pad - C_in), (0, 0)))
    w1p = jnp.transpose(w1p, (0, 2, 1)).reshape(NF, K * c_pad)
    w2p = jnp.transpose(w2, (0, 2, 1)).reshape(NF, K * w2.shape[1])    # col = k*NF + f
    return (w1p, b1[:, None], w2p, b2[:, None], wf, bf[:, None])


def reference_forward(x, torch_params):
    """Pure-JAX reference of the same forward pass (torch-layout params)."""
    w1, b1, w2, b2, wf, bf = torch_params
    K = w1.shape[-1]

    def conv1d_relu(h, w, b):            # h: (B, Cin, L), w: (Cout, Cin, K)
        l_out = h.shape[-1] - K + 1
        acc = jnp.zeros((h.shape[0], w.shape[0], l_out), jnp.float32)
        for k in range(K):
            acc = acc + jnp.einsum('oc,bcl->bol', w[:, :, k], h[:, :, k:k + l_out],
                                   precision='highest')
        return jnp.maximum(acc + b[None, :, None], 0.0)

    h1 = conv1d_relu(x, w1, b1)
    h2 = conv1d_relu(h1, w2, b2)
    pooled = jnp.max(h2, axis=2)         # (B, NF)
    return jnp.dot(pooled, wf.T, precision='highest') + bf[None, :]


if __name__ == "__main__":
    # Small, forward-consistent shapes: batch=2, input_size=4 channels, seq=16,
    # num_filters=32, output_size=8, kernel_size=3.
    B, C_IN, L = 2, 4, 16
    NUM_FILTERS, OUT, K = 32, 8, 3

    key = jax.random.PRNGKey(0)
    kx, kp = jax.random.split(key)
    x = jax.random.normal(kx, (B, C_IN, L), jnp.float32)

    torch_params = init_torch_params(kp, C_IN, OUT, NUM_FILTERS, K)
    packed = pack_params(torch_params)

    y = custom_cnn_forward(x, packed, kernel_size=K)
    y = jax.block_until_ready(y)

    y_ref = reference_forward(x, torch_params)
    assert y.shape == (B, OUT)
    max_err = float(jnp.max(jnp.abs(y - y_ref)))
    assert jnp.allclose(y, y_ref, rtol=1e-5, atol=2e-5), \
        f"mismatch vs reference (max abs err {max_err:.3e})"

    print("KERNEL_OK")
</pallas_src>

<mosaic_0001>
module attributes {stable_mosaic.version = 11 : i64} {
  func.func @kernel(%arg0: i32, %arg1: memref<8x32xf32, #tpu.memory_space<vmem>>, %arg2: memref<32x24xf32, #tpu.memory_space<vmem>>, %arg3: memref<32x1xf32, #tpu.memory_space<vmem>>, %arg4: memref<32x96xf32, #tpu.memory_space<vmem>>, %arg5: memref<32x1xf32, #tpu.memory_space<vmem>>, %arg6: memref<8x32xf32, #tpu.memory_space<vmem>>, %arg7: memref<8x1xf32, #tpu.memory_space<vmem>>, %arg8: memref<8x2xf32, #tpu.memory_space<vmem>>) attributes {dimension_semantics = [#tpu.dimension_semantics<parallel>], iteration_bounds = array<i64: 1>, scalar_prefetch = 0 : i64, scratch_operands = 0 : i64, tpu.core_type = #tpu.core_type<tc>, window_params = [{transform_indices = @transform_0, window_bounds = array<i64: 8, 32>}, {pipeline_mode = #tpu.pipeline_mode<synchronous>, transform_indices = @transform_1, window_bounds = array<i64: 32, 24>}, {pipeline_mode = #tpu.pipeline_mode<synchronous>, transform_indices = @transform_2, window_bounds = array<i64: 32, 1>}, {pipeline_mode = #tpu.pipeline_mode<synchronous>, transform_indices = @transform_3, window_bounds = array<i64: 32, 96>}, {pipeline_mode = #tpu.pipeline_mode<synchronous>, transform_indices = @transform_4, window_bounds = array<i64: 32, 1>}, {pipeline_mode = #tpu.pipeline_mode<synchronous>, transform_indices = @transform_5, window_bounds = array<i64: 8, 32>}, {pipeline_mode = #tpu.pipeline_mode<synchronous>, transform_indices = @transform_6, window_bounds = array<i64: 8, 1>}, {transform_indices = @transform_7, window_bounds = array<i64: 8, 2>}]} {
    %c0 = arith.constant 0 : index
    %c0_0 = arith.constant 0 : index
    %0 = vector.load %arg1[%c0, %c0_0] : memref<8x32xf32, #tpu.memory_space<vmem>>, vector<8x32xf32>
    %cst = arith.constant 0.000000e+00 : f32
    %1 = vector.broadcast %cst : f32 to vector<8x2xf32>
    %2 = tpu.concatenate %0, %1 in 1 : vector<8x32xf32>, vector<8x2xf32> -> vector<8x34xf32>
    %3 = vector.extract_strided_slice %2 {offsets = [0, 0], sizes = [8, 32], strides = [1, 1]} : vector<8x34xf32> to vector<8x32xf32>
    %4 = vector.extract_strided_slice %2 {offsets = [0, 1], sizes = [8, 32], strides = [1, 1]} : vector<8x34xf32> to vector<8x32xf32>
    %5 = vector.extract_strided_slice %2 {offsets = [0, 2], sizes = [8, 32], strides = [1, 1]} : vector<8x34xf32> to vector<8x32xf32>
    %6 = tpu.concatenate %3, %4, %5 in 0 : vector<8x32xf32>, vector<8x32xf32>, vector<8x32xf32> -> vector<24x32xf32>
    %c0_1 = arith.constant 0 : index
    %c0_2 = arith.constant 0 : index
    %7 = vector.load %arg2[%c0_1, %c0_2] : memref<32x24xf32, #tpu.memory_space<vmem>>, vector<32x24xf32>
    %cst_3 = arith.constant dense<0.000000e+00> : vector<32x32xf32>
    %8 = tpu.matmul %7, %6, %cst_3 {dimension_numbers = #tpu.dot_dimension_numbers<[1], [0], [0], [1], [0, 0, 1, 1], [], []>, precision = #tpu.contract_precision<fp32>} : vector<32x24xf32>, vector<24x32xf32>, vector<32x32xf32> -> vector<32x32xf32>
    %c0_4 = arith.constant 0 : index
    %c0_5 = arith.constant 0 : index
    %9 = vector.load %arg3[%c0_4, %c0_5] : memref<32x1xf32, #tpu.memory_space<vmem>>, vector<32x1xf32>
    %10 = vector.broadcast %9 : vector<32x1xf32> to vector<32x32xf32>
    %11 = arith.addf %8, %10 : vector<32x32xf32>
    %cst_6 = arith.constant 0.000000e+00 : f32
    %12 = vector.broadcast %cst_6 : f32 to vector<32x32xf32>
    %13 = arith.maximumf %11, %12 : vector<32x32xf32>
    %cst_7 = arith.constant 0.000000e+00 : f32
    %14 = vector.broadcast %cst_7 : f32 to vector<32x2xf32>
    %15 = tpu.concatenate %13, %14 in 1 : vector<32x32xf32>, vector<32x2xf32> -> vector<32x34xf32>
    %16 = vector.extract_strided_slice %15 {offsets = [0, 0], sizes = [32, 32], strides = [1, 1]} : vector<32x34xf32> to vector<32x32xf32>
    %17 = vector.extract_strided_slice %15 {offsets = [0, 1], sizes = [32, 32], strides = [1, 1]} : vector<32x34xf32> to vector<32x32xf32>
    %18 = vector.extract_strided_slice %15 {offsets = [0, 2], sizes = [32, 32], strides = [1, 1]} : vector<32x34xf32> to vector<32x32xf32>
    %19 = tpu.concatenate %16, %17, %18 in 0 : vector<32x32xf32>, vector<32x32xf32>, vector<32x32xf32> -> vector<96x32xf32>
    %c0_8 = arith.constant 0 : index
    %c0_9 = arith.constant 0 : index
    %20 = vector.load %arg4[%c0_8, %c0_9] : memref<32x96xf32, #tpu.memory_space<vmem>>, vector<32x96xf32>
    %cst_10 = arith.constant dense<0.000000e+00> : vector<32x32xf32>
    %21 = tpu.matmul %20, %19, %cst_10 {dimension_numbers = #tpu.dot_dimension_numbers<[1], [0], [0], [1], [0, 0, 1, 1], [], []>, precision = #tpu.contract_precision<fp32>} : vector<32x96xf32>, vector<96x32xf32>, vector<32x32xf32> -> vector<32x32xf32>
    %c0_11 = arith.constant 0 : index
    %c0_12 = arith.constant 0 : index
    %22 = vector.load %arg5[%c0_11, %c0_12] : memref<32x1xf32, #tpu.memory_space<vmem>>, vector<32x1xf32>
    %23 = vector.broadcast %22 : vector<32x1xf32> to vector<32x32xf32>
    %24 = arith.addf %21, %23 : vector<32x32xf32>
    %cst_13 = arith.constant 0.000000e+00 : f32
    %25 = vector.broadcast %cst_13 : f32 to vector<32x32xf32>
    %26 = arith.maximumf %24, %25 : vector<32x32xf32>
    %27 = vector.extract_strided_slice %26 {offsets = [0, 0], sizes = [32, 12], strides = [1, 1]} : vector<32x32xf32> to vector<32x12xf32>
    %cst_14 = arith.constant dense<0xFF800000> : vector<32xf32>
    %28 = vector.multi_reduction <maximumf>, %27, %cst_14 [1] : vector<32x12xf32> to vector<32xf32>
    %29 = vector.shape_cast %28 : vector<32xf32> to vector<32x1xf32>
    %30 = vector.extract_strided_slice %26 {offsets = [0, 16], sizes = [32, 12], strides = [1, 1]} : vector<32x32xf32> to vector<32x12xf32>
    %cst_15 = arith.constant dense<0xFF800000> : vector<32xf32>
    %31 = vector.multi_reduction <maximumf>, %30, %cst_15 [1] : vector<32x12xf32> to vector<32xf32>
    %32 = vector.shape_cast %31 : vector<32xf32> to vector<32x1xf32>
    %33 = tpu.concatenate %29, %32 in 1 : vector<32x1xf32>, vector<32x1xf32> -> vector<32x2xf32>
    %c0_16 = arith.constant 0 : index
    %c0_17 = arith.constant 0 : index
    %34 = vector.load %arg6[%c0_16, %c0_17] : memref<8x32xf32, #tpu.memory_space<vmem>>, vector<8x32xf32>
    %cst_18 = arith.constant dense<0.000000e+00> : vector<8x2xf32>
    %35 = tpu.matmul %34, %33, %cst_18 {dimension_numbers = #tpu.dot_dimension_numbers<[1], [0], [0], [1], [0, 0, 1, 1], [], []>, precision = #tpu.contract_precision<fp32>} : vector<8x32xf32>, vector<32x2xf32>, vector<8x2xf32> -> vector<8x2xf32>
    %c0_19 = arith.constant 0 : index
    %c0_20 = arith.constant 0 : index
    %36 = vector.load %arg7[%c0_19, %c0_20] : memref<8x1xf32, #tpu.memory_space<vmem>>, vector<8x1xf32>
    %37 = vector.broadcast %36 : vector<8x1xf32> to vector<8x2xf32>
    %38 = arith.addf %35, %37 : vector<8x2xf32>
    %c0_21 = arith.constant 0 : index
    %c0_22 = arith.constant 0 : index
    %39 = vector.load %arg8[%c0_21, %c0_22] : memref<8x2xf32, #tpu.memory_space<vmem>>, vector<8x2xf32>
    tpu.vector_store %arg8[%c0_21, %c0_22], %38 {strides = array<i32>} : memref<8x2xf32, #tpu.memory_space<vmem>>, vector<8x2xf32>,
    return
  }
  func.func @transform_0(%arg0: i32) -> (i32, i32) {
    %c0_i32 = arith.constant 0 : i32
    %c0_i32_0 = arith.constant 0 : i32
    return %c0_i32, %arg0 : i32, i32
  }
  func.func @transform_1(%arg0: i32) -> (i32, i32) {
    %c0_i32 = arith.constant 0 : i32
    %c0_i32_0 = arith.constant 0 : i32
    %c0_i32_1 = arith.constant 0 : i32
    return %c0_i32, %c0_i32_0 : i32, i32
  }
  func.func @transform_2(%arg0: i32) -> (i32, i32) {
    %c0_i32 = arith.constant 0 : i32
    %c0_i32_0 = arith.constant 0 : i32
    %c0_i32_1 = arith.constant 0 : i32
    return %c0_i32, %c0_i32_0 : i32, i32
  }
  func.func @transform_3(%arg0: i32) -> (i32, i32) {
    %c0_i32 = arith.constant 0 : i32
    %c0_i32_0 = arith.constant 0 : i32
    %c0_i32_1 = arith.constant 0 : i32
    return %c0_i32, %c0_i32_0 : i32, i32
  }
  func.func @transform_4(%arg0: i32) -> (i32, i32) {
    %c0_i32 = arith.constant 0 : i32
    %c0_i32_0 = arith.constant 0 : i32
    %c0_i32_1 = arith.constant 0 : i32
    return %c0_i32, %c0_i32_0 : i32, i32
  }
  func.func @transform_5(%arg0: i32) -> (i32, i32) {
    %c0_i32 = arith.constant 0 : i32
    %c0_i32_0 = arith.constant 0 : i32
    %c0_i32_1 = arith.constant 0 : i32
    return %c0_i32, %c0_i32_0 : i32, i32
  }
  func.func @transform_6(%arg0: i32) -> (i32, i32) {
    %c0_i32 = arith.constant 0 : i32
    %c0_i32_0 = arith.constant 0 : i32
    %c0_i32_1 = arith.constant 0 : i32
    return %c0_i32, %c0_i32_0 : i32, i32
  }
  func.func @transform_7(%arg0: i32) -> (i32, i32) {
    %c0_i32 = arith.constant 0 : i32
    %c0_i32_0 = arith.constant 0 : i32
    return %c0_i32, %arg0 : i32, i32
  }
}

</mosaic_0001>

<bundles_post_ra>
// kernel: custom_cnn_forward.1
= control target key start
LH: loop header
LB: loop body
LE: loop exit
PB: predicated region body
PF: predicated region fallthrough
CT: control target
= control target key end

     0   :  { %vm27_vm0 = vcmask 261120   ;;  %vm64_vm1 = vcmask 195584   ;;  %s2767_s11 = smov 126   ;;  %v2768_v15 = vmov 0   ;;  %vm742_vm2 = vcmask 785408   ;;  %s3145_s0 = inlined_call_operand.vmem [shape: f32[8,32], index: 0, kind: input, shape index: {}]   ;;  %s3146_s1 = inlined_call_operand.vmem [shape: f32[32,24], index: 1, kind: input, shape index: {}]   ;;  %s3147_s2 = inlined_call_operand.vmem [shape: f32[32,1], index: 2, kind: input, shape index: {}]   ;;  %s3148_s3 = inlined_call_operand.vmem [shape: f32[32,96], index: 3, kind: input, shape index: {}]   ;;  %s3149_s4 = inlined_call_operand.vmem [shape: f32[32,1], index: 4, kind: input, shape index: {}]   ;;  %s3150_s6 = inlined_call_operand.vmem [shape: f32[8,1], index: 6, kind: input, shape index: {}]   ;;  %s3151_s5 = inlined_call_operand.vmem [shape: f32[8,32], index: 5, kind: input, shape index: {}]   ;;  %s3152_s7 = inlined_call_operand.vmem [shape: f32[8,2], index: 7, kind: output, shape index: {}]  }
   0x1   :  { %v26_v0 = vld [vmem:[%s3145_s0] sm:$0xff]  ;;  %v37_v2 = vld [vmem:[%s3146_s1 + $0x8] sm:$0xff]  ;;  %v38_v6 = vld [vmem:[%s3146_s1 + $0x10] sm:$0xff]  ;;  %s2766_s0 = smov 127   ;;  %2764 = vset.pattern.permute.xlu1 %v2768_v15  ;;  %2765 = vset.pattern.permute.xlu0 %v2768_v15  ;;  %vm1490_vm3 = vcmask 228480   ;;  %vm1477_vm4 = vcmask 97280  }
   0x2   :  { %v36_v1 = vld [vmem:[%s3146_s1] sm:$0xff]  ;;  %v28_v3 = vsel %vm27_vm0, %v26_v0, 0.0  ;;  %v69_v5 = vsel %vm64_vm1, %v37_v2, 0  ;;  %v39_v7 = vld [vmem:[%s3146_s1 + $0x18] sm:$0xff]  ;;  %v72_v9 = vsel %vm64_vm1, %v38_v6, 0  ;;  %v42_v17 = vld [vmem:[%s3147_s2 + $0x10] sm:$0xff] }
   0x3   :  { %v66_v4 = vsel %vm64_vm1, %v36_v1, 0  ;;  %30 = vrot.lane.b32.xlu0 %v28_v3, %s2766_s0  ;;  %v75_v10 = vsel %vm64_vm1, %v39_v7, 0  ;;  %v40_v16 = vld [vmem:[%s3147_s2] sm:$0xff]  ;;  %v41_v18 = vld [vmem:[%s3147_s2 + $0x8] sm:$0xff]  ;;  %v43_v19 = vld [vmem:[%s3147_s2 + $0x18] sm:$0xff]  ;;  %v2851_v20 = vand.u32 4294901760, %v69_v5 }
   0x4   :  { %v2829_v8 = vand.u32 4294901760, %v66_v4  ;;  %46 = vperm.xlu1 %2764, %v40_v16   ;;  %v78_v21 = vand.u32 4294901760, %v28_v3  ;;  %v2853_v22 = vand.u32 4294901760, %v72_v9  ;;  %v2856_v25 = vand.u32 4294901760, %v75_v10  ;;  %v714_v62 = vld [vmem:[%s3148_s3] sm:$0xff]  ;;  %v715_v2 = vld [vmem:[%s3148_s3 + $0x8] sm:$0xff] }
   0x5   :  { %v156_v23 = vsub.f32 %v69_v5, %v2851_v20  ;;  %v744_v1 = vsel %vm742_vm2, %v714_v62, 0  ;;  %v2885_v7 = vsel %vm742_vm2, %v715_v2, 0  ;;  %v716_v15 = vld [vmem:[%s3148_s3 + $0x10] sm:$0xff]  ;;  %vm2770_vm5 = vmmov 0  }
   0x6   :  { %v2832_v11 = vsub.f32 %v66_v4, %v2829_v8  ;;  %v187_v24 = vsub.f32 %v28_v3, %v78_v21  ;;  %v166_v26 = vsub.f32 %v72_v9, %v2853_v22  ;;  %v176_v29 = vsub.f32 %v75_v10, %v2856_v25 }
   0x7   :  { %33 = vrot.lane.b32.xlu0 %v28_v3, %s2767_s11  ;;  %v157_v27 = vand.u32 4294901760, %v156_v23  ;;  %v2882_v6 = vand.u32 4294901760, %v744_v1  ;;  %vm1503_vm6 = vcmask 7168   ;;  %vm2003_vm7 = vcmask 15360  }
   0x8   :  { %v147_v12 = vand.u32 4294901760, %v2832_v11  ;;  %51 = vperm.xlu1 %2764, %v41_v18   ;;  %v188_v28 = vand.u32 4294901760, %v187_v24  ;;  %v167_v31 = vand.u32 4294901760, %v166_v26  ;;  %v177_v37 = vand.u32 4294901760, %v176_v29 }
   0x9   :  { %v158_v33 = vsub.f32 %v156_v23, %v157_v27  ;;  %2303 = vmatprep.mubr.f32.mxu1 %v2882_v6  ;;  %v2899_v18 = vsel %vm742_vm2, %v716_v15, 0 }
   0xa   :  { %v148_v13 = vsub.f32 %v2832_v11, %v147_v12  ;;  %v189_v36 = vsub.f32 %v187_v24, %v188_v28  ;;  %v168_v39 = vsub.f32 %v166_v26, %v167_v31  ;;  %v178_v46 = vsub.f32 %v176_v29, %v177_v37 }
   0xb   :  { %56 = vperm.xlu0 %2765, %v42_v17   ;;  %v159_v42 = vand.u32 4294901760, %v158_v33 }
   0xc   :  { %v149_v14 = vand.u32 4294901760, %v148_v13  ;;  %61 = vperm.xlu1 %2764, %v43_v19   ;;  %v190_v45 = vand.u32 4294901760, %v189_v36  ;;  %v169_v47 = vand.u32 4294901760, %v168_v39  ;;  %v179_v51 = vand.u32 4294901760, %v178_v46 }
   0xe   :  { %2183 = vmatprep.mubr.f32.mxu0 %v149_v14  ;;  %v2891_v14 = vsub.f32 %v744_v1, %v2882_v6 }
  0x75   :  { %v31_v30 = vpop.permute.xlu0 %30 }
  0x76   :  { %v81_v32 = vand.u32 4294901760, %v31_v30 }
  0x78   :  { %v2495_v34 = vpack.c.bf16 %v81_v32, %v78_v21  ;;  %v194_v35 = vsub.f32 %v31_v30, %v81_v32  ;;  %v834_v21 = vand.u32 4294901760, %v2891_v14 }
  0x79   :  { %v34_v38 = vpop.permute.xlu0 %33 }
  0x7a   :  { %v195_v40 = vand.u32 4294901760, %v194_v35  ;;  %v84_v41 = vand.u32 4294901760, %v34_v38  ;;  %2496 = vmatprep.subr.bf16.mxu0 %v2495_v34  ;;  %v2503_v54 = vpack.c.bf16 %v194_v35, %v187_v24 }
  0x7b   :  { %2498 = vmatpush3.bf16.msra.mxu0 %v2495_v34 }
  0x7c   :  { %v196_v43 = vsub.f32 %v194_v35, %v195_v40  ;;  %v201_v44 = vsub.f32 %v34_v38, %v84_v41  ;;  %2181 = vmatprep.subr.mxu0 %v84_v41  ;;  %v2511_v55 = vpack.c.bf16 %v195_v40, %v188_v28 }
  0x7e   :  { %v197_v48 = vand.u32 4294901760, %v196_v43  ;;  %v202_v49 = vand.u32 4294901760, %v201_v44 }
  0x7f   :  { %2182 = vmatpush3.msra.mxu0 %v84_v41 }
  0x80   :  { %2184 = vmatmul.mubr.f32.vlgmr.msra.gmra.mrb[0].mxu0 %v159_v42  ;;  %v2499_v50 = vpack.c.bf16 %v197_v48, %v190_v45  ;;  %v203_v52 = vsub.f32 %v201_v44, %v202_v49 }
  0x81   :  { %2186 = vmatprep.mubr.f32.mxu0 %v169_v47 }
  0x82   :  { %2500 = vmatprep.subr.bf16.mxu0 %v2499_v50  ;;  %v204_v53 = vand.u32 4294901760, %v203_v52 }
  0x83   :  { %2502 = vmatpush3.bf16.msra.mxu0 %v2499_v50  ;;  %v47_v56 = vpop.permute.xlu1 %46 }
  0x84   :  { %2187 = vmatmul.mubr.f32.gmra.mrb[2].mxu0 %v179_v51  ;;  %2193 = vmatprep.subr.mxu0 %v204_v53  ;;  %v719_v51 = vld [vmem:[%s3149_s4 + $0x8] sm:$0xff] }
  0x85   :  { %2195 = vmatprep.mubr.f32.mxu0 %v2829_v8 }
  0x87   :  { %2194 = vmatpush3.msra.mxu0 %v204_v53  ;;  %v52_v57 = vpop.permute.xlu1 %51  ;;  %v718_v53 = vld [vmem:[%s3149_s4] sm:$0xff] }
  0x88   :  { %2196 = vmatmul.mubr.f32.vlgmr.msra.gmra.mrb[0].mxu0 %v2851_v20  ;;  %2504 = vmatprep.subr.bf16.mxu0 %v2503_v54 }
  0x89   :  { %2506 = vmatpush3.bf16.msra.mxu0 %v2503_v54  ;;  %2198 = vmatprep.mubr.f32.mxu0 %v2853_v22 }
  0x8a   :  { %2205 = vmatprep.subr.mxu0 %v201_v44  ;;  %v57_v0 = vpop.permute.xlu0 %56 }
  0x8b   :  { %v62_v3 = vpop.permute.xlu1 %61 }
  0x8c   :  { %2199 = vmatmul.mubr.f32.gmra.mrb[2].mxu0 %v2856_v25 }
  0x8d   :  { %2206 = vmatpush3.msra.mxu0 %v201_v44  ;;  %2207 = vmatprep.mubr.f32.mxu0 %v2832_v11 }
  0x8e   :  { %2508 = vmatprep.subr.bf16.mxu0 %v2495_v34 }
  0x90   :  { %2208 = vmatmul.mubr.f32.vlgmr.msra.gmra.mrb[0].mxu0 %v156_v23 }
  0x91   :  { %2510 = vmatpush3.bf16.msra.mxu0 %v2495_v34  ;;  %2210 = vmatprep.mubr.f32.mxu0 %v166_v26 }
  0x92   :  { %2217 = vmatprep.subr.mxu0 %v84_v41 }
  0x94   :  { %2211 = vmatmul.mubr.f32.gmra.mrb[2].mxu0 %v176_v29  ;;  %v835_v29 = vsub.f32 %v2891_v14, %v834_v21 }
  0x95   :  { %2218 = vmatpush3.msra.mxu0 %v84_v41  ;;  %2219 = vmatprep.mubr.f32.mxu0 %v147_v12 }
  0x96   :  { %2512 = vmatprep.subr.bf16.mxu0 %v2511_v55 }
  0x98   :  { %2220 = vmatmul.mubr.f32.vlgmr.msra.gmra.mrb[0].mxu0 %v157_v27 }
  0x99   :  { %2514 = vmatpush3.bf16.msra.mxu0 %v2511_v55  ;;  %2222 = vmatprep.mubr.f32.mxu0 %v167_v31  ;;  %v721_v55 = vld [vmem:[%s3149_s4 + $0x18] sm:$0xff] }
  0x9a   :  { %2229 = vmatprep.subr.mxu0 %v202_v49 }
  0x9c   :  { %2223 = vmatmul.mubr.f32.gmra.mrb[2].mxu0 %v177_v37 }
  0x9d   :  { %2230 = vmatpush3.msra.mxu0 %v202_v49  ;;  %2231 = vmatprep.mubr.f32.mxu0 %v2829_v8 }
  0x9e   :  { %2516 = vmatprep.subr.bf16.mxu0 %v2495_v34 }
  0xa0   :  { %2232 = vmatmul.mubr.f32.vlgmr.msra.gmra.mrb[0].mxu0 %v2851_v20 }
  0xa1   :  { %2518 = vmatpush3.bf16.msra.mxu0 %v2495_v34  ;;  %2234 = vmatprep.mubr.f32.mxu0 %v2853_v22  ;;  %v836_v34 = vand.u32 4294901760, %v835_v29 }
  0xa2   :  { %2241 = vmatprep.subr.mxu0 %v84_v41 }
  0xa4   :  { %2235 = vmatmul.mubr.f32.gmra.mrb[2].mxu0 %v2856_v25 }
  0xa5   :  { %2242 = vmatpush3.msra.mxu0 %v84_v41  ;;  %2243 = vmatprep.mubr.f32.mxu0 %v2829_v8 }
  0xa8   :  { %2244 = vmatmul.mubr.f32.vlgmr.msra.gmra.mrb[0].mxu0 %v2851_v20 }
  0xa9   :  { %2246 = vmatprep.mubr.f32.mxu0 %v2853_v22 }
  0xac   :  { %2247 = vmatmul.mubr.f32.gmra.mrb[2].mxu0 %v2856_v25  ;;  %v717_v25 = vld [vmem:[%s3148_s3 + $0x18] sm:$0xff] }
  0xad   :  { %v2917_v35 = vsel %vm742_vm2, %v717_v25, 0  ;;  %2273 = vmatprep.mubr.f32.mxu0 %v836_v34 }
 0x17b   :  { %v2245_v58 = vpop.f32.mrb[0].mxu0 }
 0x17c   :  { %v2699_v59 = vadd.f32 %v2245_v58, %v52_v57  ;;  %v656_v60 = vpop.f32.mrb[1].mxu0  ;;  %v2948_v57 = vand.u32 4294901760, %v2885_v7 }
 0x17d   :  { %v2700_v61 = vadd.f32 %v656_v60, %v47_v56  ;;  %v720_v56 = vld [vmem:[%s3149_s4 + $0x10] sm:$0xff] }
 0x17e   :  { %v679_v63 = vmax.f32 %v2699_v59, 0.0 }
 0x17f   :  { %v678_v4 = vmax.f32 %v2700_v61, 0.0  ;;  %v2248_v5 = vpop.f32.mrb[2].mxu0 }
 0x180   :  { %v683_v8 = vsel %vm27_vm0, %v679_v63, 0.0  ;;  %v2701_v9 = vadd.f32 %v2248_v5, %v62_v3  ;;  %v668_v10 = vpop.f32.mrb[3].mxu0  ;;  %v2954_v63 = vsub.f32 %v2885_v7, %v2948_v57  ;;  %v2967_v7 = vand.u32 4294901760, %v2917_v35 }
 0x181   :  { %v759_v11 = vand.u32 4294901760, %v683_v8  ;;  %v682_v12 = vsel %vm27_vm0, %v678_v4, 0.0  ;;  %v2702_v13 = vadd.f32 %v668_v10, %v57_v0  ;;  %692 = vrot.lane.b32.xlu0 %v683_v8, %s2766_s0  ;;  %v2957_v0 = vand.u32 4294901760, %v2899_v18 }
 0x182   :  { %v756_v16 = vand.u32 4294901760, %v682_v12  ;;  %v681_v17 = vmax.f32 %v2701_v9, 0.0  ;;  %690 = vrot.lane.b32.xlu1 %v682_v12, %s2766_s0 }
 0x183   :  { %v881_v19 = vsub.f32 %v683_v8, %v759_v11  ;;  %v680_v20 = vmax.f32 %v2702_v13, 0.0  ;;  %v844_v13 = vand.u32 4294901760, %v2954_v63  ;;  %v2976_v15 = vsub.f32 %v2899_v18, %v2957_v0 }
 0x184   :  { %v2902_v22 = vpack.c.bf16 %v759_v11, %v756_v16  ;;  %v874_v23 = vsub.f32 %v682_v12, %v756_v16  ;;  %v685_v24 = vsel %vm27_vm0, %v681_v17, 0.0 }
 0x185   :  { %v765_v26 = vand.u32 4294901760, %v685_v24  ;;  %v684_v27 = vsel %vm27_vm0, %v680_v20, 0.0  ;;  %696 = vrot.lane.b32.xlu0 %v685_v24, %s2766_s0  ;;  %v882_v28 = vand.u32 4294901760, %v881_v19  ;;  %v854_v34 = vand.u32 4294901760, %v2976_v15 }
 0x186   :  { %v762_v30 = vand.u32 4294901760, %v684_v27  ;;  %694 = vrot.lane.b32.xlu1 %v684_v27, %s2766_s0  ;;  %2520 = vmatprep.subr.bf16.mxu0 %v2902_v22  ;;  %v875_v31 = vand.u32 4294901760, %v874_v23  ;;  %v2924_v43 = vpack.c.bf16 %v881_v19, %v874_v23 }
 0x187   :  { %v895_v32 = vsub.f32 %v685_v24, %v765_v26  ;;  %2522 = vmatpush3.bf16.msra.mxu0 %v2902_v22  ;;  %v883_v33 = vsub.f32 %v881_v19, %v882_v28 }
 0x188   :  { %v2919_v36 = vpack.c.bf16 %v765_v26, %v762_v30  ;;  %v888_v37 = vsub.f32 %v684_v27, %v762_v30  ;;  %v876_v38 = vsub.f32 %v874_v23, %v875_v31  ;;  %v2929_v46 = vpack.c.bf16 %v882_v28, %v875_v31 }
 0x189   :  { %704 = vrot.lane.b32.xlu0 %v683_v8, %s2767_s11  ;;  %v884_v39 = vand.u32 4294901760, %v883_v33  ;;  %v896_v40 = vand.u32 4294901760, %v895_v32  ;;  %v2990_v30 = vsub.f32 %v2917_v35, %v2967_v7  ;;  %v845_v33 = vsub.f32 %v2954_v63, %v844_v13 }
 0x18a   :  { %702 = vrot.lane.b32.xlu1 %v682_v12, %s2767_s11  ;;  %2524 = vmatprep.subr.bf16.mxu0 %v2919_v36  ;;  %v877_v41 = vand.u32 4294901760, %v876_v38  ;;  %v889_v42 = vand.u32 4294901760, %v888_v37  ;;  %v2926_v44 = vpack.c.bf16 %v895_v32, %v888_v37 }
 0x18b   :  { %2526 = vmatpush3.bf16.msra.mxu0 %v2919_v36  ;;  %v897_v45 = vsub.f32 %v895_v32, %v896_v40 }
 0x18c   :  { %v2543_v47 = vpack.c.bf16 %v884_v39, %v877_v41  ;;  %v890_v48 = vsub.f32 %v888_v37, %v889_v42  ;;  %v2931_v49 = vpack.c.bf16 %v896_v40, %v889_v42 }
 0x18d   :  { %708 = vrot.lane.b32.xlu0 %v685_v24, %s2767_s11  ;;  %v898_v50 = vand.u32 4294901760, %v897_v45 }
 0x18e   :  { %706 = vrot.lane.b32.xlu1 %v684_v27, %s2767_s11  ;;  %2544 = vmatprep.subr.bf16.mxu1 %v2543_v47  ;;  %v891_v52 = vand.u32 4294901760, %v890_v48 }
 0x18f   :  { %2546 = vmatpush3.bf16.msra.mxu1 %v2543_v47 }
 0x190   :  { %v2547_v54 = vpack.c.bf16 %v898_v50, %v891_v52 }
 0x191   :  { %729 = vperm.xlu0 %2765, %v719_v51  }
 0x192   :  { %724 = vperm.xlu1 %2764, %v718_v53   ;;  %2548 = vmatprep.subr.bf16.mxu1 %v2547_v54  ;;  %v864_v53 = vand.u32 4294901760, %v2990_v30 }
 0x193   :  { %2550 = vmatpush3.bf16.msra.mxu1 %v2547_v54 }
 0x195   :  { %739 = vperm.xlu0 %2765, %v721_v55  }
 0x196   :  { %734 = vperm.xlu1 %2764, %v720_v56   ;;  %v855_v56 = vsub.f32 %v2976_v15, %v854_v34 }
 0x1f3   :  { %v693_v58 = vpop.permute.xlu0 %692 }
 0x1f4   :  { %v771_v59 = vand.u32 4294901760, %v693_v58  ;;  %v691_v60 = vpop.permute.xlu1 %690 }
 0x1f5   :  { %v768_v61 = vand.u32 4294901760, %v691_v60 }
 0x1f6   :  { %v2950_v62 = vsub.f32 %v693_v58, %v771_v59 }
 0x1f7   :  { %v2959_v1 = vpack.c.bf16 %v771_v59, %v768_v61  ;;  %v2961_v2 = vsub.f32 %v691_v60, %v768_v61  ;;  %v697_v3 = vpop.permute.xlu0 %696 }
 0x1f8   :  { %v910_v4 = vand.u32 4294901760, %v2950_v62  ;;  %v777_v5 = vand.u32 4294901760, %v697_v3  ;;  %v695_v8 = vpop.permute.xlu1 %694 }
 0x1f9   :  { %v903_v9 = vand.u32 4294901760, %v2961_v2  ;;  %v774_v10 = vand.u32 4294901760, %v695_v8  ;;  %2528 = vmatprep.subr.bf16.mxu0 %v2959_v1 }
 0x1fa   :  { %v911_v11 = vsub.f32 %v2950_v62, %v910_v4  ;;  %v2970_v12 = vsub.f32 %v697_v3, %v777_v5  ;;  %2530 = vmatpush3.bf16.msra.mxu0 %v2959_v1 }
 0x1fb   :  { %v904_v16 = vsub.f32 %v2961_v2, %v903_v9  ;;  %v2979_v17 = vpack.c.bf16 %v777_v5, %v774_v10  ;;  %v2981_v19 = vsub.f32 %v695_v8, %v774_v10  ;;  %v705_v20 = vpop.permute.xlu0 %704  ;;  %v2983_v23 = vpack.c.bf16 %v910_v4, %v903_v9 }
 0x1fc   :  { %v924_v24 = vand.u32 4294901760, %v2970_v12  ;;  %v783_v25 = vand.u32 4294901760, %v705_v20  ;;  %v703_v26 = vpop.permute.xlu1 %702  ;;  %v912_v27 = vand.u32 4294901760, %v911_v11  ;;  %v846_v9 = vand.u32 4294901760, %v845_v33 }
 0x1fd   :  { %v917_v28 = vand.u32 4294901760, %v2981_v19  ;;  %v780_v29 = vand.u32 4294901760, %v703_v26  ;;  %2532 = vmatprep.subr.bf16.mxu0 %v2979_v17  ;;  %v905_v18 = vand.u32 4294901760, %v904_v16  ;;  %v865_v11 = vsub.f32 %v2990_v30, %v864_v53 }
 0x1fe   :  { %v925_v31 = vsub.f32 %v2970_v12, %v924_v24  ;;  %v2993_v32 = vsub.f32 %v705_v20, %v783_v25  ;;  %2534 = vmatpush3.bf16.msra.mxu0 %v2979_v17  ;;  %v856_v20 = vand.u32 4294901760, %v855_v56  ;;  %v2579_v33 = vpack.c.bf16 %v2970_v12, %v2981_v19 }
 0x1ff   :  { %v918_v37 = vsub.f32 %v2981_v19, %v917_v28  ;;  %v3001_v38 = vpack.c.bf16 %v783_v25, %v780_v29  ;;  %v3003_v39 = vsub.f32 %v703_v26, %v780_v29  ;;  %v709_v35 = vpop.permute.xlu0 %708  ;;  %v2551_v40 = vpack.c.bf16 %v912_v27, %v905_v18 }
 0x200   :  { %v938_v41 = vand.u32 4294901760, %v2993_v32  ;;  %v789_v42 = vand.u32 4294901760, %v709_v35  ;;  %v707_v45 = vpop.permute.xlu1 %706  ;;  %v926_v47 = vand.u32 4294901760, %v925_v31  ;;  %v3006_v48 = vpack.c.bf16 %v924_v24, %v917_v28 }
 0x201   :  { %v931_v50 = vand.u32 4294901760, %v3003_v39  ;;  %v786_v51 = vand.u32 4294901760, %v707_v45  ;;  %2536 = vmatprep.subr.bf16.mxu0 %v3001_v38  ;;  %2552 = vmatprep.subr.bf16.mxu1 %v2551_v40  ;;  %v919_v52 = vand.u32 4294901760, %v918_v37  ;;  %v866_v28 = vand.u32 4294901760, %v865_v11 }
 0x202   :  { %v939_v54 = vsub.f32 %v2993_v32, %v938_v41  ;;  %v951_v55 = vsub.f32 %v709_v35, %v789_v42  ;;  %2538 = vmatpush3.bf16.msra.mxu0 %v3001_v38  ;;  %2554 = vmatpush3.bf16.msra.mxu1 %v2551_v40  ;;  %v2575_v31 = vpack.c.bf16 %v2950_v62, %v2961_v2 }
 0x203   :  { %v932_v58 = vsub.f32 %v3003_v39, %v931_v50  ;;  %v3017_v59 = vpack.c.bf16 %v789_v42, %v786_v51  ;;  %v944_v60 = vsub.f32 %v707_v45, %v786_v51  ;;  %v2555_v61 = vpack.c.bf16 %v926_v47, %v919_v52  ;;  %v1508_v52 = vld [vmem:[%s3151_s5] sm:$0xff] }
 0x204   :  { %v952_v3 = vand.u32 4294901760, %v951_v55  ;;  %v940_v4 = vand.u32 4294901760, %v939_v54  ;;  %v3019_v5 = vpack.c.bf16 %v938_v41, %v931_v50  ;;  %v1509_v50 = vld [vmem:[%s3150_s6] sm:$0xff]  ;;  %v2771_v51 = vmov 0.0  }
 0x205   :  { %v945_v8 = vand.u32 4294901760, %v944_v60  ;;  %2540 = vmatprep.subr.bf16.mxu0 %v3017_v59  ;;  %2556 = vmatprep.subr.bf16.mxu1 %v2555_v61  ;;  %v933_v10 = vand.u32 4294901760, %v932_v58  ;;  %v2587_v37 = vpack.c.bf16 %v951_v55, %v944_v60 }
 0x206   :  { %v953_v16 = vsub.f32 %v951_v55, %v952_v3  ;;  %2542 = vmatpush3.bf16.msra.mxu0 %v3017_v59  ;;  %2558 = vmatpush3.bf16.msra.mxu1 %v2555_v61 }
 0x207   :  { %v946_v24 = vsub.f32 %v944_v60, %v945_v8  ;;  %v2559_v25 = vpack.c.bf16 %v940_v4, %v933_v10  ;;  %v2635_v26 = vpack.c.bf16 %v952_v3, %v945_v8 }
 0x208   :  { %v954_v27 = vand.u32 4294901760, %v953_v16 }
 0x209   :  { %2274 = vmatmul.mubr.f32.vlgmr.msra.gmra.mrb[4].mxu0 %v846_v9  ;;  %2560 = vmatprep.subr.bf16.mxu1 %v2559_v25  ;;  %v947_v29 = vand.u32 4294901760, %v946_v24 }
 0x20a   :  { %2562 = vmatpush3.bf16.msra.mxu1 %v2559_v25  ;;  %2276 = vmatprep.mubr.f32.mxu0 %v856_v20 }
 0x20b   :  { %v2563_v18 = vpack.c.bf16 %v954_v27, %v947_v29 }
 0x20d   :  { %2277 = vmatmul.mubr.f32.gmra.mrb[6].mxu0 %v866_v28  ;;  %2564 = vmatprep.subr.bf16.mxu1 %v2563_v18 }
 0x20e   :  { %2566 = vmatpush3.bf16.msra.mxu1 %v2563_v18  ;;  %2437 = vmatprep.mubr.msk.f32.mxu0 %vm2770_vm5, %v2771_v51 }
 0x20f   :  { %2568 = vmatprep.subr.bf16.mxu1 %v2924_v43 }
 0x211   :  { %2304 = vmatmul.mubr.f32.vlgmr.msra.gmra.mrb[0].mxu1 %v2948_v57 }
 0x212   :  { %2570 = vmatpush3.bf16.msra.mxu1 %v2924_v43  ;;  %2306 = vmatprep.mubr.f32.mxu1 %v2957_v0  ;;  %v2583_v43 = vpack.c.bf16 %v2993_v32, %v3003_v39 }
 0x213   :  { %2572 = vmatprep.subr.bf16.mxu1 %v2926_v44 }
 0x215   :  { %2307 = vmatmul.mubr.f32.gmra.mrb[2].mxu1 %v2967_v7 }
 0x216   :  { %2574 = vmatpush3.bf16.msra.mxu1 %v2926_v44  ;;  %2333 = vmatprep.mubr.f32.mxu1 %v2891_v14  ;;  %v725_v44 = vpop.permute.xlu1 %724 }
 0x217   :  { %2576 = vmatprep.subr.bf16.mxu1 %v2575_v31 }
 0x21a   :  { %2578 = vmatpush3.bf16.msra.mxu1 %v2575_v31 }
 0x21b   :  { %2580 = vmatprep.subr.bf16.mxu1 %v2579_v33 }
 0x21e   :  { %2582 = vmatpush3.bf16.msra.mxu1 %v2579_v33 }
 0x21f   :  { %2584 = vmatprep.subr.bf16.mxu1 %v2583_v43 }
 0x222   :  { %2586 = vmatpush3.bf16.msra.mxu1 %v2583_v43 }
 0x223   :  { %2588 = vmatprep.subr.bf16.mxu1 %v2587_v37 }
 0x226   :  { %2590 = vmatpush3.bf16.msra.mxu1 %v2587_v37 }
 0x227   :  { %2592 = vmatprep.subr.bf16.mxu1 %v2902_v22 }
 0x229   :  { %2334 = vmatmul.mubr.f32.vlgmr.msra.gmra.mrb[0].mxu1 %v2954_v63 }
 0x22a   :  { %2594 = vmatpush3.bf16.msra.mxu1 %v2902_v22  ;;  %2336 = vmatprep.mubr.f32.mxu1 %v2976_v15 }
 0x22b   :  { %2596 = vmatprep.subr.bf16.mxu1 %v2919_v36 }
 0x22d   :  { %2337 = vmatmul.mubr.f32.gmra.mrb[2].mxu1 %v2990_v30 }
 0x22e   :  { %2598 = vmatpush3.bf16.msra.mxu1 %v2919_v36  ;;  %2363 = vmatprep.mubr.f32.mxu1 %v834_v21 }
 0x22f   :  { %2600 = vmatprep.subr.bf16.mxu1 %v2959_v1 }
 0x232   :  { %2602 = vmatpush3.bf16.msra.mxu1 %v2959_v1 }
 0x233   :  { %2604 = vmatprep.subr.bf16.mxu1 %v2979_v17 }
 0x236   :  { %2606 = vmatpush3.bf16.msra.mxu1 %v2979_v17 }
 0x237   :  { %2608 = vmatprep.subr.bf16.mxu1 %v3001_v38 }
 0x23a   :  { %2610 = vmatpush3.bf16.msra.mxu1 %v3001_v38 }
 0x23b   :  { %2612 = vmatprep.subr.bf16.mxu1 %v3017_v59 }
 0x23e   :  { %2614 = vmatpush3.bf16.msra.mxu1 %v3017_v59 }
 0x23f   :  { %2616 = vmatprep.subr.bf16.mxu1 %v2929_v46 }
 0x241   :  { %2364 = vmatmul.mubr.f32.vlgmr.msra.gmra.mrb[0].mxu1 %v844_v13 }
 0x242   :  { %2618 = vmatpush3.bf16.msra.mxu1 %v2929_v46  ;;  %2366 = vmatprep.mubr.f32.mxu1 %v854_v34 }
 0x243   :  { %2620 = vmatprep.subr.bf16.mxu1 %v2931_v49 }
 0x245   :  { %2367 = vmatmul.mubr.f32.gmra.mrb[2].mxu1 %v864_v53  ;;  %v1516_v53 = vsel %vm27_vm0, %v1508_v52, 0 }
 0x246   :  { %2622 = vmatpush3.bf16.msra.mxu1 %v2931_v49  ;;  %2393 = vmatprep.mubr.f32.mxu1 %v2882_v6  ;;  %v3112_v58 = vand.u32 4294901760, %v1516_v53 }
 0x247   :  { %2624 = vmatprep.subr.bf16.mxu1 %v2983_v23 }
 0x248   :  { %v1588_v4 = vsub.f32 %v1516_v53, %v3112_v58 }
 0x24a   :  { %2626 = vmatpush3.bf16.msra.mxu1 %v2983_v23  ;;  %v1589_v20 = vand.u32 4294901760, %v1588_v4 }
 0x24b   :  { %2628 = vmatprep.subr.bf16.mxu1 %v3006_v48 }
 0x24c   :  { %v1590_v31 = vsub.f32 %v1588_v4, %v1589_v20 }
 0x24e   :  { %2630 = vmatpush3.bf16.msra.mxu1 %v3006_v48  ;;  %v2769_v48 = vmov 0.0|0.0  }
 0x24f   :  { %2632 = vmatprep.subr.bf16.mxu1 %v3019_v5  ;;  %2663 = vmatprep.subr.bf16.mxu0 %v2769_v48 }
 0x252   :  { %2634 = vmatpush3.bf16.msra.mxu1 %v3019_v5 }
 0x253   :  { %2636 = vmatprep.subr.bf16.mxu1 %v2635_v26 }
 0x256   :  { %2638 = vmatpush3.bf16.msra.mxu1 %v2635_v26 }
 0x257   :  { %2640 = vmatprep.subr.bf16.mxu1 %v2902_v22 }
 0x259   :  { %2394 = vmatmul.mubr.f32.vlgmr.msra.gmra.mrb[0].mxu1 %v2948_v57 }
 0x25a   :  { %2642 = vmatpush3.bf16.msra.mxu1 %v2902_v22  ;;  %2396 = vmatprep.mubr.f32.mxu1 %v2957_v0 }
 0x25b   :  { %2644 = vmatprep.subr.bf16.mxu1 %v2919_v36 }
 0x25d   :  { %2397 = vmatmul.mubr.f32.gmra.mrb[2].mxu1 %v2967_v7 }
 0x25e   :  { %2646 = vmatpush3.bf16.msra.mxu1 %v2919_v36  ;;  %2423 = vmatprep.mubr.f32.mxu1 %v2882_v6  ;;  %v730_v36 = vpop.permute.xlu0 %729 }
 0x25f   :  { %2648 = vmatprep.subr.bf16.mxu1 %v2959_v1 }
 0x262   :  { %2650 = vmatpush3.bf16.msra.mxu1 %v2959_v1  ;;  %v740_v2 = vpop.permute.xlu0 %739 }
 0x263   :  { %2652 = vmatprep.subr.bf16.mxu1 %v2979_v17 }
 0x266   :  { %2654 = vmatpush3.bf16.msra.mxu1 %v2979_v17 }
 0x267   :  { %2656 = vmatprep.subr.bf16.mxu1 %v3001_v38 }
 0x26a   :  { %2658 = vmatpush3.bf16.msra.mxu1 %v3001_v38 }
 0x26b   :  { %2660 = vmatprep.subr.bf16.mxu1 %v3017_v59 }
 0x26e   :  { %2662 = vmatpush3.bf16.msra.mxu1 %v3017_v59 }
 0x271   :  { %2424 = vmatmul.mubr.f32.vlgmr.msra.gmra.mrb[0].mxu1 %v2948_v57  ;;  %v735_v57 = vpop.permute.xlu1 %734 }
 0x272   :  { %2426 = vmatprep.mubr.f32.mxu1 %v2957_v0 }
 0x275   :  { %2427 = vmatmul.mubr.f32.gmra.mrb[2].mxu1 %v2967_v7 }
 0x2dc   :  { %v2275_v6 = vpop.f32.mrb[4].mxu0 }
 0x2dd   :  { %v838_v14 = vpop.f32.mrb[5].mxu0  ;;  %v849_v46 = vadd.f32 %v2275_v6, %v730_v36  ;;  %v1591_v36 = vand.u32 4294901760, %v1590_v31 }
 0x2de   :  { %v839_v49 = vadd.f32 %v838_v14, %v725_v44 }
 0x2e0   :  { %v2278_v21 = vpop.f32.mrb[6].mxu0 }
 0x2e1   :  { %v858_v22 = vpop.f32.mrb[7].mxu0  ;;  %v869_v13 = vadd.f32 %v2278_v21, %v740_v2 }
 0x2e2   :  { %v859_v15 = vadd.f32 %v858_v22, %v735_v57 }
 0x344   :  { %v2425_v62 = vpop.f32.mrb[0].mxu1 }
 0x345   :  { %v2704_v63 = vadd.f32 %v2425_v62, %v849_v46  ;;  %v1451_v1 = vpop.f32.mrb[1].mxu1 }
 0x346   :  { %v2706_v12 = vadd.f32 %v1451_v1, %v839_v49 }
 0x347   :  { %v1474_v0 = vmax.f32 %v2704_v63, 0.0 }
 0x348   :  { %v2428_v7 = vpop.f32.mrb[2].mxu1  ;;  %v1473_v17 = vmax.f32 %v2706_v12, 0.0 }
 0x349   :  { %v2708_v19 = vadd.f32 %v2428_v7, %v869_v13  ;;  %v1463_v23 = vpop.f32.mrb[3].mxu1  ;;  %v1494_v30 = vsel %vm1490_vm3, %v1474_v0, -inf  ;;  %v1481_v32 = vsel %vm1477_vm4, %v1474_v0, -inf }
 0x34a   :  { %v2710_v34 = vadd.f32 %v1463_v23, %v859_v15  ;;  %1495 = vmax.xlane.f32.xlu1 %v1494_v30  ;;  %1482 = vmax.xlane.f32.xlu0 %v1481_v32  ;;  %v1491_v35 = vsel %vm1490_vm3, %v1473_v17, -inf  ;;  %v1478_v40 = vsel %vm1477_vm4, %v1473_v17, -inf }
 0x34b   :  { %v1476_v38 = vmax.f32 %v2708_v19, 0.0 }
 0x34c   :  { %v1475_v39 = vmax.f32 %v2710_v34, 0.0 }
 0x34d   :  { %v1487_v42 = vsel %vm1477_vm4, %v1476_v38, -inf  ;;  %v1500_v47 = vsel %vm1490_vm3, %v1476_v38, -inf }
 0x34e   :  { %1492 = vmax.xlane.f32.xlu0 %v1491_v35  ;;  %1479 = vmax.xlane.f32.xlu1 %v1478_v40  ;;  %v1484_v41 = vsel %vm1477_vm4, %v1475_v39, -inf  ;;  %v1497_v45 = vsel %vm1490_vm3, %v1475_v39, -inf }
 0x352   :  { %1485 = vmax.xlane.f32.xlu0 %v1484_v41  ;;  %1488 = vmax.xlane.f32.xlu1 %v1487_v42 }
 0x356   :  { %1498 = vmax.xlane.f32.xlu0 %v1497_v45  ;;  %1501 = vmax.xlane.f32.xlu1 %v1500_v47 }
 0x36c   :  { %1512 = vperm.xlu0 %2765, %v1509_v50  }
 0x3d7   :  { %v1496_v54 = vpop.xlane.xlu1 %1495  ;;  %v1483_v55 = vpop.xlane.xlu0 %1482 }
 0x3d8   :  { %v1505_v56 = vsel %vm1503_vm6, %v1483_v55, %v1496_v54 }
 0x3d9   :  { %v1522_v59 = vand.u32 4294901760, %v1505_v56 }
 0x3db   :  { %v1493_v60 = vpop.xlane.xlu0 %1492  ;;  %v1480_v61 = vpop.xlane.xlu1 %1479  ;;  %v1606_v5 = vsub.f32 %v1505_v56, %v1522_v59 }
 0x3dc   :  { %v1504_v3 = vsel %vm1503_vm6, %v1480_v61, %v1493_v60 }
 0x3dd   :  { %v1519_v8 = vand.u32 4294901760, %v1504_v3  ;;  %v1607_v24 = vand.u32 4294901760, %v1606_v5 }
 0x3df   :  { %v2664_v9 = vpack.c.bf16 %v1522_v59, %v1519_v8  ;;  %v1599_v10 = vsub.f32 %v1504_v3, %v1519_v8  ;;  %v1486_v11 = vpop.xlane.xlu0 %1485  ;;  %v1489_v16 = vpop.xlane.xlu1 %1488  ;;  %v1608_v33 = vsub.f32 %v1606_v5, %v1607_v24 }
 0x3e1   :  { %v1600_v25 = vand.u32 4294901760, %v1599_v10  ;;  %2665 = vmatpush3.bf16.msra.mxu0 %v2664_v9  ;;  %v1609_v44 = vand.u32 4294901760, %v1608_v33  ;;  %v2676_v13 = vpack.c.bf16 %v1606_v5, %v1599_v10 }
 0x3e2   :  { %2666 = vmatprep.subr.bf16.mxu0 %v2769_v48 }
 0x3e3   :  { %v1601_v26 = vsub.f32 %v1599_v10, %v1600_v25  ;;  %v1499_v27 = vpop.xlane.xlu0 %1498  ;;  %v1502_v28 = vpop.xlane.xlu1 %1501  ;;  %v2688_v15 = vpack.c.bf16 %v1607_v24, %v1600_v25 }
 0x3e4   :  { %v1506_v29 = vsel %vm1503_vm6, %v1486_v11, %v1499_v27  ;;  %v1507_v18 = vsel %vm1503_vm6, %v1489_v16, %v1502_v28 }
 0x3e5   :  { %v1525_v43 = vand.u32 4294901760, %v1506_v29  ;;  %v1528_v37 = vand.u32 4294901760, %v1507_v18  ;;  %v1602_v6 = vand.u32 4294901760, %v1601_v26 }
 0x3e7   :  { %v1613_v14 = vsub.f32 %v1506_v29, %v1525_v43  ;;  %v2667_v21 = vpack.c.bf16 %v1528_v37, %v1525_v43  ;;  %v1620_v22 = vsub.f32 %v1507_v18, %v1528_v37  ;;  %v2670_v1 = vpack.c.bf16 %v1609_v44, %v1602_v6 }
 0x3e9   :  { %v1614_v46 = vand.u32 4294901760, %v1613_v14  ;;  %v1621_v49 = vand.u32 4294901760, %v1620_v22  ;;  %2668 = vmatpush3.bf16.msra.mxu0 %v2667_v21  ;;  %v2679_v0 = vpack.c.bf16 %v1620_v22, %v1613_v14 }
 0x3ea   :  { %2669 = vmatprep.subr.bf16.mxu0 %v2769_v48 }
 0x3eb   :  { %v1615_v62 = vsub.f32 %v1613_v14, %v1614_v46  ;;  %v1622_v63 = vsub.f32 %v1620_v22, %v1621_v49  ;;  %v2691_v7 = vpack.c.bf16 %v1621_v49, %v1614_v46  ;;  %v1513_v17 = vpop.permute.xlu0 %1512 }
 0x3ec   :  { %2438 = vmatmul.mubr.f32.vlgmr.msra.gmra.mrb[8].mxu0 %v1591_v36 }
 0x3ed   :  { %v1616_v2 = vand.u32 4294901760, %v1615_v62  ;;  %v1623_v12 = vand.u32 4294901760, %v1622_v63  ;;  %2671 = vmatpush3.bf16.msra.mxu0 %v2670_v1  ;;  %2448 = vmatprep.mubr.msk.f32.mxu0 %vm2770_vm5, %v2771_v51 }
 0x3ee   :  { %2672 = vmatprep.subr.bf16.mxu0 %v2769_v48 }
 0x3ef   :  { %v2673_v57 = vpack.c.bf16 %v1623_v12, %v1616_v2 }
 0x3f1   :  { %2674 = vmatpush3.bf16.msra.mxu0 %v2673_v57 }
 0x3f2   :  { %2675 = vmatprep.subr.bf16.mxu0 %v2769_v48 }
 0x3f4   :  { %2449 = vmatmul.mubr.f32.vlgmr.msra.gmra.mrb[8].mxu0 %v3112_v58 }
 0x3f5   :  { %2677 = vmatpush3.bf16.msra.mxu0 %v2676_v13  ;;  %2459 = vmatprep.mubr.msk.f32.mxu0 %vm2770_vm5, %v2771_v51 }
 0x3f6   :  { %2678 = vmatprep.subr.bf16.mxu0 %v2769_v48 }
 0x3f9   :  { %2680 = vmatpush3.bf16.msra.mxu0 %v2679_v0 }
 0x3fa   :  { %2681 = vmatprep.subr.bf16.mxu0 %v2769_v48 }
 0x3fc   :  { %2460 = vmatmul.mubr.f32.vlgmr.msra.gmra.mrb[8].mxu0 %v1588_v4 }
 0x3fd   :  { %2683 = vmatpush3.bf16.msra.mxu0 %v2664_v9  ;;  %2470 = vmatprep.mubr.msk.f32.mxu0 %vm2770_vm5, %v2771_v51 }
 0x3fe   :  { %2684 = vmatprep.subr.bf16.mxu0 %v2769_v48 }
 0x401   :  { %2686 = vmatpush3.bf16.msra.mxu0 %v2667_v21 }
 0x402   :  { %2687 = vmatprep.subr.bf16.mxu0 %v2769_v48 }
 0x404   :  { %2471 = vmatmul.mubr.f32.vlgmr.msra.gmra.mrb[8].mxu0 %v1589_v20 }
 0x405   :  { %2689 = vmatpush3.bf16.msra.mxu0 %v2688_v15  ;;  %2481 = vmatprep.mubr.msk.f32.mxu0 %vm2770_vm5, %v2771_v51 }
 0x406   :  { %2690 = vmatprep.subr.bf16.mxu0 %v2769_v48 }
 0x409   :  { %2692 = vmatpush3.bf16.msra.mxu0 %v2691_v7 }
 0x40a   :  { %2693 = vmatprep.subr.bf16.mxu0 %v2769_v48 }
 0x40c   :  { %2482 = vmatmul.mubr.f32.vlgmr.msra.gmra.mrb[8].mxu0 %v3112_v58 }
 0x40d   :  { %2695 = vmatpush3.bf16.msra.mxu0 %v2664_v9  ;;  %2492 = vmatprep.mubr.msk.f32.mxu0 %vm2770_vm5, %v2771_v51 }
 0x40e   :  { %2696 = vmatprep.subr.bf16.mxu0 %v2769_v48 }
 0x411   :  { %2698 = vmatpush3.bf16.msra.mxu0 %v2667_v21 }
 0x414   :  { %2493 = vmatmul.mubr.f32.vlgmr.msra.gmra.mrb[8].mxu0 %v3112_v58 }
 0x4e7   :  { %v1999_v19 = vpop.f32.mrb[8].mxu0 }
 0x4e8   :  { %v2711_v23 = vadd.f32 %v1999_v19, %v1513_v17  ;;  %v2494_v30 = vpop.f32.mrb[9].mxu0 }
 0x4ea   :  { %2004 = vst.msk [vmem:[%s3152_s7] sm:$0xff] %vm2003_vm7, %v2711_v23 }

</bundles_post_ra>
